<compile_context>
chip_gen: v6e
topology: v6e:2x2x1
jax: 0.10.0
libtpu: 0.0.40
codegen_flags: <defaults>
</compile_context>

<pallas_src>
import functools
import numpy as np
import jax
import jax.numpy as jnp
from jax.experimental import pallas as pl
from jax.experimental.pallas import tpu as pltpu


def _round_up(x, m):
    return (x + m - 1) // m * m


# ----------------------------------------------------------------------------
# Fused kernel: 2-layer GCN + pair scoring + cross-entropy, all in VMEM.
# ----------------------------------------------------------------------------
def _graphfull_fused_kernel(x_ref, adj_ref, w1_ref, b1_ref, w2_ref, b2_ref,
                            img_ref, lab_ref, logits_ref, loss_ref,
                            *, pair_row_start, num_pair_rows, num_pairs,
                            batch_real):
    f32 = jnp.float32

    # ---- GCN layer 1:  H = relu(A @ (X @ W1) + b1)  (all node rows) ----
    xw1 = jnp.dot(x_ref[...], w1_ref[...], preferred_element_type=f32)
    h = jnp.maximum(
        jnp.dot(adj_ref[...], xw1, preferred_element_type=f32) + b1_ref[...],
        0.0)

    # ---- GCN layer 2 (pair rows only):  E_p = A[pair rows] @ (H @ W2) + b2 ----
    xw2 = jnp.dot(h, w2_ref[...], preferred_element_type=f32)
    a_pairs = adj_ref[pl.ds(pair_row_start, num_pair_rows), :]  # sublane-aligned
    pair_embed = (jnp.dot(a_pairs, xw2, preferred_element_type=f32)
                  + b2_ref[...])

    # ---- logits = img @ pair_embed.T  (transpose folded into dot_general) ----
    logits = jax.lax.dot_general(
        img_ref[...], pair_embed,
        dimension_numbers=(((1,), (1,)), ((), ())),
        preferred_element_type=f32)
    logits_ref[...] = logits

    # ---- cross entropy (mean over real batch rows; pad pair cols masked) ----
    bsz, npc = logits.shape
    col = jax.lax.broadcasted_iota(jnp.int32, (bsz, npc), 1)
    valid_col = col < num_pairs
    masked = jnp.where(valid_col, logits, -1e30)
    m = jnp.max(masked, axis=-1, keepdims=True)
    lse = m + jnp.log(jnp.sum(jnp.exp(masked - m), axis=-1, keepdims=True))
    # label logit via bool mask + where (no f32 one-hot materialized)
    label_logit = jnp.sum(jnp.where(col == lab_ref[...], logits, 0.0),
                          axis=-1, keepdims=True)
    per_ex = lse - label_logit                                  # (B, 1)
    row = jax.lax.broadcasted_iota(jnp.int32, per_ex.shape, 0)
    per_ex = jnp.where(row < batch_real, per_ex, 0.0)
    loss_ref[...] = jnp.sum(per_ex, axis=0, keepdims=True) / batch_real


def graphfull_train_forward(img_feats, labels, adj, node_embeddings,
                            w1, b1, w2, b2, *, num_pairs, batch_real,
                            pair_row_start):
    """Single fused pallas_call covering GCN + scoring + CE."""
    n_pad, fin = node_embeddings.shape
    n2a, n2b = adj.shape
    assert n2a == n_pad and n2b == n_pad
    fin2, fh = w1.shape
    fh2, fe = w2.shape
    b_pad, fe2 = img_feats.shape
    assert fin == fin2 and fh == fh2 and fe == fe2
    p_pad = n_pad - pair_row_start
    assert pair_row_start % 8 == 0 and p_pad % 8 == 0 and b_pad % 8 == 0
    assert fin % 128 == 0 and fh % 128 == 0 and fe % 128 == 0

    bias1 = b1.reshape(1, fh)
    bias2 = b2.reshape(1, fe)
    labels_2d = labels.reshape(b_pad, 1).astype(jnp.int32)

    args = (node_embeddings, adj, w1, bias1, w2, bias2, img_feats, labels_2d)

    # Per-call VMEM budget derived from the actual operands (+ intermediates
    # + headroom), capped at v7x's 64 MiB physical pool.  No reused constant.
    op_bytes = int(sum(int(np.prod(a.shape)) * a.dtype.itemsize for a in args))
    vmem_limit = int(min(max(4 * op_bytes + (2 << 20), 4 << 20), 64 << 20))

    flops = 2 * (n_pad * fin * fh + n_pad * n_pad * fh + n_pad * fh * fe
                 + p_pad * n_pad * fe + b_pad * fe * p_pad)

    vmem_spec = pl.BlockSpec(memory_space=pltpu.MemorySpace.VMEM)
    logits, loss = pl.pallas_call(
        functools.partial(
            _graphfull_fused_kernel,
            pair_row_start=pair_row_start, num_pair_rows=p_pad,
            num_pairs=num_pairs, batch_real=batch_real),
        out_shape=(jax.ShapeDtypeStruct((b_pad, p_pad), jnp.float32),
                   jax.ShapeDtypeStruct((1, 1), jnp.float32)),
        in_specs=[vmem_spec] * len(args),
        out_specs=(vmem_spec, vmem_spec),
        compiler_params=pltpu.CompilerParams(vmem_limit_bytes=vmem_limit),
        cost_estimate=pl.CostEstimate(
            flops=flops,
            transcendentals=b_pad * p_pad + b_pad,
            bytes_accessed=op_bytes + 4 * (b_pad * p_pad + 1)),
    )(*args)
    return loss[0, 0], logits


# ----------------------------------------------------------------------------
# Graph construction (host glue; mirrors adj_from_pairs + row normalization
# D^-1 A, with a configurable base index for the pair-node block so padded
# layouts can start the pair block on a sublane boundary).
# ----------------------------------------------------------------------------
def build_adjacency(num_attrs, num_objs, pair_idx_list, *, n_total, pair_base):
    displacement = num_attrs + num_objs
    a = np.zeros((n_total, n_total), dtype=np.float64)
    for i in range(displacement):
        a[i, i] += 1.0
    for idx, (attr_idx, obj_idx_raw) in enumerate(pair_idx_list):
        obj_idx = obj_idx_raw + num_attrs
        node_id = pair_base + idx
        a[attr_idx, obj_idx] += 1.0
        a[obj_idx, attr_idx] += 1.0
        a[node_id, node_id] += 1.0
        a[node_id, attr_idx] += 1.0
        a[node_id, obj_idx] += 1.0
        a[attr_idx, node_id] += 1.0
        a[obj_idx, node_id] += 1.0
    rowsum = a.sum(axis=1, keepdims=True)
    rowsum[rowsum == 0.0] = 1.0
    return a / rowsum                           # D^-1 A   (normt_spm 'in')


# ----------------------------------------------------------------------------
# Pure-numpy float64 reference (unpadded, original node layout)
# ----------------------------------------------------------------------------
def reference_forward_np(img, labels, adj, x, w1, b1, w2, b2,
                         num_attrs, num_objs, num_pairs):
    img = img.astype(np.float64)
    adj = adj.astype(np.float64)
    x = x.astype(np.float64)
    w1 = w1.astype(np.float64); b1 = b1.astype(np.float64)
    w2 = w2.astype(np.float64); b2 = b2.astype(np.float64)
    h = np.maximum(adj @ (x @ w1) + b1, 0.0)
    e = adj @ (h @ w2) + b2
    pe = e[num_attrs + num_objs: num_attrs + num_objs + num_pairs]
    logits = img @ pe.T
    m = logits.max(axis=1, keepdims=True)
    lse = (m + np.log(np.exp(logits - m).sum(axis=1, keepdims=True)))[:, 0]
    label_logit = logits[np.arange(logits.shape[0]), labels]
    return float(np.mean(lse - label_logit)), logits


def _pad2(x, rows, cols):
    out = np.zeros((rows, cols), np.float32)
    out[: x.shape[0], : x.shape[1]] = np.asarray(x)
    return out


def _pad1(x, n):
    out = np.zeros((n,), np.float32)
    out[: x.shape[0]] = np.asarray(x)
    return out


if __name__ == "__main__":
    # ---- synthetic dataset geometry ----
    num_attrs, num_objs = 4, 3
    pair_idx_list = [(0, 0), (0, 1), (1, 2), (2, 0), (3, 1), (3, 2)]  # (attr, obj)
    num_pairs = len(pair_idx_list)
    displacement = num_attrs + num_objs         # 7

    word_dim = 32      # initial embedding width
    emb_dim = 16       # args.emb_dim
    hidden = 32        # gr_emb='d32,d'
    batch = 8

    # ---- padded geometry: node axis -> sublane (8), feature axes -> lane (128)
    LANE, SUBLANE = 128, 8
    d_pad = _round_up(displacement, SUBLANE)    # 8   (attr/obj section)
    p_pad = _round_up(num_pairs, SUBLANE)       # 8   (pair section)
    n_pad = d_pad + p_pad                       # 16  (total graph nodes)
    fin_pad = _round_up(word_dim, LANE)         # 128
    fh_pad = _round_up(hidden, LANE)            # 128
    fe_pad = _round_up(emb_dim, LANE)           # 128
    b_pad = _round_up(batch, SUBLANE)           # 8

    key = jax.random.PRNGKey(0)
    k_word, k_w1, k_b1, k_w2, k_b2, k_img, k_lab = jax.random.split(key, 7)

    word_embeds = np.asarray(
        jax.random.normal(k_word, (displacement, word_dim), jnp.float32))
    comp = np.stack([(word_embeds[a] + word_embeds[o + num_attrs]) / 2.0
                     for (a, o) in pair_idx_list])

    w1 = np.asarray(jax.random.normal(k_w1, (word_dim, hidden), jnp.float32)) * 0.1
    b1 = np.asarray(jax.random.normal(k_b1, (hidden,), jnp.float32)) * 0.1
    w2 = np.asarray(jax.random.normal(k_w2, (hidden, emb_dim), jnp.float32)) * 0.1
    b2 = np.asarray(jax.random.normal(k_b2, (emb_dim,), jnp.float32)) * 0.1

    img_feats = np.asarray(jax.random.normal(k_img, (batch, emb_dim), jnp.float32))
    labels = np.asarray(
        jax.random.randint(k_lab, (batch,), 0, num_pairs, dtype=jnp.int32))

    # ---- padded kernel inputs. Zero padding is exact: zero node rows/cols
    #      contribute nothing; padded pair columns (>= num_pairs) are masked
    #      in the CE and sliced away before comparison (they carry +b2). ----
    x_pad = np.zeros((n_pad, fin_pad), np.float32)
    x_pad[:displacement, :word_dim] = word_embeds
    x_pad[d_pad:d_pad + num_pairs, :word_dim] = comp

    adj_pad = build_adjacency(num_attrs, num_objs, pair_idx_list,
                              n_total=n_pad, pair_base=d_pad).astype(np.float32)

    w1_pad = _pad2(w1, fin_pad, fh_pad)
    b1_pad = _pad1(b1, fh_pad)
    w2_pad = _pad2(w2, fh_pad, fe_pad)
    b2_pad = _pad1(b2, fe_pad)
    img_pad = _pad2(img_feats, b_pad, fe_pad)
    lab_pad = np.zeros((b_pad,), np.int32)
    lab_pad[:batch] = labels

    loss, logits_pad = graphfull_train_forward(
        jnp.asarray(img_pad), jnp.asarray(lab_pad), jnp.asarray(adj_pad),
        jnp.asarray(x_pad), jnp.asarray(w1_pad), jnp.asarray(b1_pad),
        jnp.asarray(w2_pad), jnp.asarray(b2_pad),
        num_pairs=num_pairs, batch_real=batch, pair_row_start=d_pad)
    jax.block_until_ready((loss, logits_pad))
    pair_pred = np.asarray(logits_pad)[:batch, :num_pairs]

    # ---- float64 reference on the unpadded, original layout ----
    adj_ref = build_adjacency(num_attrs, num_objs, pair_idx_list,
                              n_total=displacement + num_pairs,
                              pair_base=displacement)
    x_ref = np.concatenate([word_embeds, comp], axis=0)
    ref_loss, ref_logits = reference_forward_np(
        img_feats, labels, adj_ref, x_ref, w1, b1, w2, b2,
        num_attrs, num_objs, num_pairs)

    # Tolerance leaves slack for the MXU's internal bf16-pass lowering of f32
    # matmuls; structural errors (wrong slice / normalization / bias) would
    # exceed it by orders of magnitude.
    assert np.allclose(pair_pred, ref_logits, rtol=3e-2, atol=3e-2), \
        "pair_pred mismatch"
    assert abs(float(loss) - ref_loss) < 3e-2, "loss mismatch"

    print("KERNEL_OK")
</pallas_src>

<mosaic_0001>
module attributes {stable_mosaic.version = 11 : i64} {
  func.func @_graphfull_fused_kernel(%arg0: memref<16x128xf32, #tpu.memory_space<vmem>>, %arg1: memref<16x16xf32, #tpu.memory_space<vmem>>, %arg2: memref<128x128xf32, #tpu.memory_space<vmem>>, %arg3: memref<1x128xf32, #tpu.memory_space<vmem>>, %arg4: memref<128x128xf32, #tpu.memory_space<vmem>>, %arg5: memref<1x128xf32, #tpu.memory_space<vmem>>, %arg6: memref<8x128xf32, #tpu.memory_space<vmem>>, %arg7: memref<8x1xi32, #tpu.memory_space<vmem>>, %arg8: memref<8x8xf32, #tpu.memory_space<vmem>>, %arg9: memref<1x1xf32, #tpu.memory_space<vmem>>) attributes {dimension_semantics = [], scalar_prefetch = 0 : i64, scratch_operands = 0 : i64, tpu.core_type = #tpu.core_type<tc>} {
    %c0 = arith.constant 0 : index
    %c0_0 = arith.constant 0 : index
    %0 = vector.load %arg0[%c0, %c0_0] : memref<16x128xf32, #tpu.memory_space<vmem>>, vector<16x128xf32>
    %c0_1 = arith.constant 0 : index
    %c0_2 = arith.constant 0 : index
    %1 = vector.load %arg2[%c0_1, %c0_2] : memref<128x128xf32, #tpu.memory_space<vmem>>, vector<128x128xf32>
    %cst = arith.constant dense<0.000000e+00> : vector<16x128xf32>
    %2 = tpu.matmul %0, %1, %cst {dimension_numbers = #tpu.dot_dimension_numbers<[1], [0], [0], [1], [0, 0, 1, 1], [], []>} : vector<16x128xf32>, vector<128x128xf32>, vector<16x128xf32> -> vector<16x128xf32>
    %c0_3 = arith.constant 0 : index
    %c0_4 = arith.constant 0 : index
    %3 = vector.load %arg1[%c0_3, %c0_4] : memref<16x16xf32, #tpu.memory_space<vmem>>, vector<16x16xf32>
    %cst_5 = arith.constant dense<0.000000e+00> : vector<16x128xf32>
    %4 = tpu.matmul %3, %2, %cst_5 {dimension_numbers = #tpu.dot_dimension_numbers<[1], [0], [0], [1], [0, 0, 1, 1], [], []>} : vector<16x16xf32>, vector<16x128xf32>, vector<16x128xf32> -> vector<16x128xf32>
    %c0_6 = arith.constant 0 : index
    %c0_7 = arith.constant 0 : index
    %5 = vector.load %arg3[%c0_6, %c0_7] : memref<1x128xf32, #tpu.memory_space<vmem>>, vector<1x128xf32>
    %6 = vector.broadcast %5 : vector<1x128xf32> to vector<16x128xf32>
    %7 = arith.addf %4, %6 : vector<16x128xf32>
    %cst_8 = arith.constant 0.000000e+00 : f32
    %8 = vector.broadcast %cst_8 : f32 to vector<16x128xf32>
    %9 = arith.maximumf %7, %8 : vector<16x128xf32>
    %c0_9 = arith.constant 0 : index
    %c0_10 = arith.constant 0 : index
    %10 = vector.load %arg4[%c0_9, %c0_10] : memref<128x128xf32, #tpu.memory_space<vmem>>, vector<128x128xf32>
    %cst_11 = arith.constant dense<0.000000e+00> : vector<16x128xf32>
    %11 = tpu.matmul %9, %10, %cst_11 {dimension_numbers = #tpu.dot_dimension_numbers<[1], [0], [0], [1], [0, 0, 1, 1], [], []>} : vector<16x128xf32>, vector<128x128xf32>, vector<16x128xf32> -> vector<16x128xf32>
    %c8 = arith.constant 8 : index
    %c0_12 = arith.constant 0 : index
    %12 = vector.load %arg1[%c8, %c0_12] : memref<16x16xf32, #tpu.memory_space<vmem>>, vector<8x16xf32>
    %cst_13 = arith.constant dense<0.000000e+00> : vector<8x128xf32>
    %13 = tpu.matmul %12, %11, %cst_13 {dimension_numbers = #tpu.dot_dimension_numbers<[1], [0], [0], [1], [0, 0, 1, 1], [], []>} : vector<8x16xf32>, vector<16x128xf32>, vector<8x128xf32> -> vector<8x128xf32>
    %c0_14 = arith.constant 0 : index
    %c0_15 = arith.constant 0 : index
    %14 = vector.load %arg5[%c0_14, %c0_15] : memref<1x128xf32, #tpu.memory_space<vmem>>, vector<1x128xf32>
    %15 = vector.broadcast %14 : vector<1x128xf32> to vector<8x128xf32>
    %16 = arith.addf %13, %15 : vector<8x128xf32>
    %c0_16 = arith.constant 0 : index
    %c0_17 = arith.constant 0 : index
    %17 = vector.load %arg6[%c0_16, %c0_17] : memref<8x128xf32, #tpu.memory_space<vmem>>, vector<8x128xf32>
    %cst_18 = arith.constant dense<0.000000e+00> : vector<8x8xf32>
    %18 = tpu.matmul %17, %16, %cst_18 {dimension_numbers = #tpu.dot_dimension_numbers<[1], [1], [0], [0], [0, 0, 1, 0], [], []>} : vector<8x128xf32>, vector<8x128xf32>, vector<8x8xf32> -> vector<8x8xf32>
    %c0_19 = arith.constant 0 : index
    %c0_20 = arith.constant 0 : index
    %19 = vector.load %arg8[%c0_19, %c0_20] : memref<8x8xf32, #tpu.memory_space<vmem>>, vector<8x8xf32>
    tpu.vector_store %arg8[%c0_19, %c0_20], %18 {strides = array<i32>} : memref<8x8xf32, #tpu.memory_space<vmem>>, vector<8x8xf32>,
    %20 = tpu.iota {dimensions = array<i32: 1>} : vector<8x8xi32>
    %c6_i32 = arith.constant 6 : i32
    %21 = vector.broadcast %c6_i32 : i32 to vector<8x8xi32>
    %22 = arith.cmpi slt, %20, %21 : vector<8x8xi32>
    %cst_21 = arith.constant -1.000000e+30 : f32
    %23 = vector.broadcast %cst_21 : f32 to vector<8x8xf32>
    %24 = arith.select %22, %18, %23 : vector<8x8xi1>, vector<8x8xf32>
    %cst_22 = arith.constant dense<0xFF800000> : vector<8xf32>
    %25 = vector.multi_reduction <maximumf>, %24, %cst_22 [1] : vector<8x8xf32> to vector<8xf32>
    %26 = vector.shape_cast %25 : vector<8xf32> to vector<8x1xf32>
    %27 = vector.broadcast %26 : vector<8x1xf32> to vector<8x8xf32>
    %28 = arith.subf %24, %27 : vector<8x8xf32>
    %29 = math.exp %28 : vector<8x8xf32>
    %cst_23 = arith.constant dense<0.000000e+00> : vector<8xf32>
    %30 = vector.multi_reduction <add>, %29, %cst_23 [1] : vector<8x8xf32> to vector<8xf32>
    %31 = vector.shape_cast %30 : vector<8xf32> to vector<8x1xf32>
    %32 = math.log %31 : vector<8x1xf32>
    %33 = arith.addf %26, %32 : vector<8x1xf32>
    %c0_24 = arith.constant 0 : index
    %c0_25 = arith.constant 0 : index
    %34 = vector.load %arg7[%c0_24, %c0_25] : memref<8x1xi32, #tpu.memory_space<vmem>>, vector<8x1xi32>
    %35 = vector.broadcast %34 : vector<8x1xi32> to vector<8x8xi32>
    %36 = arith.cmpi eq, %20, %35 : vector<8x8xi32>
    %cst_26 = arith.constant 0.000000e+00 : f32
    %37 = vector.broadcast %cst_26 : f32 to vector<8x8xf32>
    %38 = arith.select %36, %18, %37 : vector<8x8xi1>, vector<8x8xf32>
    %cst_27 = arith.constant dense<0.000000e+00> : vector<8xf32>
    %39 = vector.multi_reduction <add>, %38, %cst_27 [1] : vector<8x8xf32> to vector<8xf32>
    %40 = vector.shape_cast %39 : vector<8xf32> to vector<8x1xf32>
    %41 = arith.subf %33, %40 : vector<8x1xf32>
    %42 = tpu.iota {dimensions = array<i32: 0>} : vector<8x1xi32>
    %c8_i32 = arith.constant 8 : i32
    %43 = vector.broadcast %c8_i32 : i32 to vector<8x1xi32>
    %44 = arith.cmpi slt, %42, %43 : vector<8x1xi32>
    %cst_28 = arith.constant 0.000000e+00 : f32
    %45 = vector.broadcast %cst_28 : f32 to vector<8x1xf32>
    %46 = arith.select %44, %41, %45 : vector<8x1xi1>, vector<8x1xf32>
    %cst_29 = arith.constant dense<0.000000e+00> : vector<1xf32>
    %47 = vector.multi_reduction <add>, %46, %cst_29 [0] : vector<8x1xf32> to vector<1xf32>
    %48 = vector.shape_cast %47 : vector<1xf32> to vector<1x1xf32>
    %cst_30 = arith.constant 8.000000e+00 : f32
    %49 = vector.broadcast %cst_30 : f32 to vector<1x1xf32>
    %50 = arith.divf %48, %49 : vector<1x1xf32>
    %c0_31 = arith.constant 0 : index
    %c0_32 = arith.constant 0 : index
    %51 = vector.load %arg9[%c0_31, %c0_32] : memref<1x1xf32, #tpu.memory_space<vmem>>, vector<1x1xf32>
    tpu.vector_store %arg9[%c0_31, %c0_32], %50 {strides = array<i32>} : memref<1x1xf32, #tpu.memory_space<vmem>>, vector<1x1xf32>,
    return
  }
}

</mosaic_0001>

<bundles_post_ra>
// kernel: tpu_custom_call.1
= control target key start
LH: loop header
LB: loop body
LE: loop exit
PB: predicated region body
PF: predicated region fallthrough
CT: control target
= control target key end

     0   :  { %15 = vsyncpa [#allocation3], 0  ;;  %s985_s0 = inlined_call_operand.hbm [shape: f32[16,128], index: 0, kind: input, shape index: {}]   ;;  %s986_s1 = inlined_call_operand.hbm [shape: f32[16,16], index: 1, kind: input, shape index: {}]   ;;  %s987_s2 = inlined_call_operand.hbm [shape: f32[128,128], index: 2, kind: input, shape index: {}]   ;;  %s988_s3 = inlined_call_operand.vmem [shape: f32[1,128], index: 3, kind: input, shape index: {}]   ;;  %s989_s4 = inlined_call_operand.hbm [shape: f32[128,128], index: 4, kind: input, shape index: {}]   ;;  %s990_s5 = inlined_call_operand.vmem [shape: f32[1,128], index: 5, kind: input, shape index: {}]   ;;  %s991_s6 = inlined_call_operand.vmem [shape: f32[8,128], index: 6, kind: input, shape index: {}]   ;;  %s992_s7 = inlined_call_operand.vmem [shape: s32[8,1], index: 7, kind: input, shape index: {}]   ;;  %s993_s8 = inlined_call_operand.hbm [shape: f32[8,8], index: 8, kind: output, shape index: {0}]   ;;  %s994_s9 = inlined_call_operand.hbm [shape: f32[1,1], index: 9, kind: output, shape index: {1}]  }
   0x1   :  { %16 = vsyncpa [#allocation6], 0 }
   0x2   :  { %17 = vsyncpa [#allocation9], 0 }
   0x3   :  { %18 = vsyncpa [#allocation4], 0 }
   0x4   :  { %19 = vsyncpa [#allocation12], 0  ;;  %s871_s30 = smov [#allocation5]   ;;  %s872_s11 = smov [#allocation2]  }
   0x5   :  { %s37_s10 = sshll.u32 %s871_s30, 4  ;;  %s25_s12 = sshll.u32 %s872_s11, 4  ;;  %s38_s10 = int_to_ptr.vmem [resolvable:$true] %s37_s10  ;;  %s26_s12 = int_to_ptr.vmem [resolvable:$true] %s25_s12 }
   0x6   :  { %s749_s13 = scalar_lea.vmem %s38_s10, 256  ;;  %p754_p1 = scmp.lt.s32.totalorder %s38_s10, %s38_s10 }
   0x7   :  { %p750_p0 = scmp.ne.s32.totalorder %s38_s10, %s749_s13  ;;  %p755_p2 = scmp.lt.s32.totalorder %s749_s13, %s749_s13 }
   0x9   :  { %p756_p3 = por %p755_p2, %p754_p1 }
   0xb   :  { %p757_p4 = pnand %p756_p3, %p750_p0 }
   0xd   :  { %760 = shalt.err (!%p757_p4)
}
   0xe   :  { %s873_s14 = smov 128   ;;  %s874_s15 = smov 8  }
   0xf   :  { %43 = dma.hbm_to_vmem [thread:$0]  %s986_s1, 256, %s38_s10, [#allocation6], %s873_s14, %s873_s14, %s874_s15  }
  0x10   :  { %s769_s18 = scalar_lea.vmem %s26_s12, 256  ;;  %p774_p6 = scmp.lt.s32.totalorder %s26_s12, %s26_s12 }
  0x11   :  { %p770_p5 = scmp.ne.s32.totalorder %s26_s12, %s769_s18  ;;  %p775_p7 = scmp.lt.s32.totalorder %s769_s18, %s769_s18 }
  0x13   :  { %p776_p8 = por %p775_p7, %p774_p6 }
  0x15   :  { %p777_p9 = pnand %p776_p8, %p770_p5 }
  0x17   :  { %780 = shalt.err (!%p777_p9)
}
  0x18   :  { %31 = dma.hbm_to_vmem [thread:$0]  %s985_s0, 256, %s26_s12, [#allocation3], %s873_s14, %s873_s14, %s874_s15  }
  0x19   :  { %s875_s21 = smov [#allocation7]   ;;  %s876_s23 = smov [#allocation8]  }
  0x1a   :  { %s49_s22 = sshll.u32 %s875_s21, 4  ;;  %s63_s24 = sshll.u32 %s876_s23, 4  ;;  %s50_s22 = int_to_ptr.vmem [resolvable:$true] %s49_s22  ;;  %s64_s24 = int_to_ptr.vmem [resolvable:$true] %s63_s24 }
  0x1b   :  { %s789_s1 = scalar_lea.vmem %s50_s22, 2048  ;;  %p794_p11 = scmp.lt.s32.totalorder %s50_s22, %s50_s22 }
  0x1c   :  { %p790_p10 = scmp.ne.s32.totalorder %s50_s22, %s789_s1  ;;  %p795_p12 = scmp.lt.s32.totalorder %s789_s1, %s789_s1 }
  0x1e   :  { %p796_p13 = por %p795_p12, %p794_p11 }
  0x20   :  { %p797_p0 = pnand %p796_p13, %p790_p10 }
  0x22   :  { %800 = shalt.err (!%p797_p0)
}
  0x23   :  { %55 = dma.hbm_to_vmem [thread:$0]  %s987_s2, 2048, %s50_s22, [#allocation6], %s873_s14, %s873_s14, %s874_s15  }
  0x24   :  { %s809_s0 = scalar_lea.vmem %s64_s24, 2048  ;;  %p814_p2 = scmp.lt.s32.totalorder %s64_s24, %s64_s24 }
  0x25   :  { %p810_p1 = scmp.ne.s32.totalorder %s64_s24, %s809_s0  ;;  %p815_p3 = scmp.lt.s32.totalorder %s809_s0, %s809_s0 }
  0x27   :  { %p816_p4 = por %p815_p3, %p814_p2 }
  0x29   :  { %p817_p5 = pnand %p816_p4, %p810_p1 }
  0x2b   :  { %820 = shalt.err (!%p817_p5)
}
  0x2c   :  { %69 = dma.hbm_to_vmem [thread:$0]  %s989_s4, 2048, %s64_s24, [#allocation9], %s873_s14, %s873_s14, %s874_s15  }
  0x2d   :  { %861 = dma.done.wait [#allocation3], 256  }
  0x2e   :  { %862 = vsyncadd [#allocation3], 4294967040 }
  0x2f   :  { %863 = dma.done.wait [#allocation6], 2304  }
  0x30   :  { %864 = vsyncadd [#allocation6], 4294964992 }
  0x31   :  { %865 = dma.done.wait [#allocation9], 2048  }
  0x32   :  { %866 = vsyncadd [#allocation9], 4294965248  ;;  %v105_v0 = vld [vmem:[#allocation7 + $0x78] sm:$0xff]  ;;  %v104_v1 = vld [vmem:[#allocation7 + $0x70] sm:$0xff]  ;;  %vm190_vm0 = vcmask 130048   ;;  %v877_v45 = vmov 0.0   ;;  %v515_v54 = vlaneseq }
  0x33   :  { %636 = vmatprep.subr.mxu0 %v105_v0  ;;  %v103_v2 = vld [vmem:[#allocation7 + $0x68] sm:$0xff]  ;;  %v102_v3 = vld [vmem:[#allocation7 + $0x60] sm:$0xff]  ;;  %v101_v5 = vld [vmem:[#allocation7 + $0x58] sm:$0xff]  ;;  %vm878_vm1 = vmmov 0   ;;  %v879_v53 = vmov 0   ;;  %vm513_vm2 = vcmask 64512  }
  0x34   :  { %637 = vmatpush3.msra.mxu0 %v105_v0  ;;  %v88_v4 = vld [vmem:[#allocation2] sm:$0xff]  ;;  %v100_v6 = vld [vmem:[#allocation7 + $0x50] sm:$0xff]  ;;  %v99_v7 = vld [vmem:[#allocation7 + $0x48] sm:$0xff]  ;;  %736 = vset.pattern.permute.xlu0 %v879_v53  ;;  %v516_v55 = vand.u32 127, %v515_v54 }
  0x35   :  { %638 = vmatprep.subr.mxu0 %v104_v1  ;;  %668 = vmatprep.mubr.f32.mxu0 %v88_v4  ;;  %v98_v8 = vld [vmem:[#allocation7 + $0x40] sm:$0xff]  ;;  %v97_v9 = vld [vmem:[#allocation7 + $0x38] sm:$0xff]  ;;  %v96_v10 = vld [vmem:[#allocation7 + $0x30] sm:$0xff] }
  0x36   :  { %639 = vmatpush3.msra.mxu0 %v104_v1  ;;  %v95_v11 = vld [vmem:[#allocation7 + $0x28] sm:$0xff]  ;;  %v94_v12 = vld [vmem:[#allocation7 + $0x20] sm:$0xff]  ;;  %v93_v13 = vld [vmem:[#allocation7 + $0x18] sm:$0xff]  ;;  %vm517_vm3 = vcmp.lt.s32.totalorder %v516_v55, 6 }
  0x37   :  { %640 = vmatprep.subr.mxu0 %v103_v2  ;;  %v92_v14 = vld [vmem:[#allocation7 + $0x10] sm:$0xff]  ;;  %v91_v15 = vld [vmem:[#allocation7 + $0x8] sm:$0xff]  ;;  %v90_v16 = vld [vmem:[#allocation7] sm:$0xff] }
  0x38   :  { %641 = vmatpush3.msra.mxu0 %v103_v2  ;;  %v89_v17 = vld [vmem:[#allocation2 + $0x8] sm:$0xff]  ;;  %v181_v18 = vld [vmem:[#allocation5] sm:$0xff]  ;;  %v957_v21 = vld [vmem:[#allocation5 + $0x8] sm:$0xff] }
  0x39   :  { %642 = vmatprep.subr.mxu0 %v102_v3  ;;  %675 = vmatprep.mubr.msk.f32.mxu1 %vm190_vm0, %v181_v18  ;;  %v289_v22 = vld [vmem:[#allocation8 + $0x78] sm:$0xff]  ;;  %v288_v23 = vld [vmem:[#allocation8 + $0x70] sm:$0xff]  ;;  %v287_v24 = vld [vmem:[#allocation8 + $0x68] sm:$0xff] }
  0x3a   :  { %643 = vmatpush3.msra.mxu0 %v102_v3  ;;  %v286_v25 = vld [vmem:[#allocation8 + $0x60] sm:$0xff]  ;;  %v285_v26 = vld [vmem:[#allocation8 + $0x58] sm:$0xff]  ;;  %v284_v27 = vld [vmem:[#allocation8 + $0x50] sm:$0xff] }
  0x3b   :  { %644 = vmatprep.subr.mxu0 %v101_v5  ;;  %v283_v28 = vld [vmem:[#allocation8 + $0x48] sm:$0xff]  ;;  %v282_v29 = vld [vmem:[#allocation8 + $0x40] sm:$0xff]  ;;  %v281_v30 = vld [vmem:[#allocation8 + $0x38] sm:$0xff] }
  0x3c   :  { %645 = vmatpush3.msra.mxu0 %v101_v5  ;;  %v280_v31 = vld [vmem:[#allocation8 + $0x30] sm:$0xff]  ;;  %v279_v32 = vld [vmem:[#allocation8 + $0x28] sm:$0xff]  ;;  %v278_v33 = vld [vmem:[#allocation8 + $0x20] sm:$0xff] }
  0x3d   :  { %646 = vmatprep.subr.mxu0 %v100_v6  ;;  %v277_v34 = vld [vmem:[#allocation8 + $0x18] sm:$0xff]  ;;  %v276_v35 = vld [vmem:[#allocation8 + $0x10] sm:$0xff]  ;;  %v275_v36 = vld [vmem:[#allocation8 + $0x8] sm:$0xff] }
  0x3e   :  { %647 = vmatpush3.msra.mxu0 %v100_v6  ;;  %v274_v37 = vld [vmem:[#allocation8] sm:$0xff] }
  0x3f   :  { %648 = vmatprep.subr.mxu0 %v99_v7  ;;  %v586_v38 = vld [vmem:[%s988_s3] ss:$0 sm:$0xff] }
  0x40   :  { %649 = vmatpush3.msra.mxu0 %v99_v7  ;;  %v589_v48 = vld [vmem:[%s990_s5] ss:$0 sm:$0xff] }
  0x41   :  { %650 = vmatprep.subr.mxu0 %v98_v8  ;;  %v442_v52 = vld [vmem:[%s991_s6] sm:$0xff]  ;;  %s880_s6 = smov [#allocation10]  }
  0x42   :  { %651 = vmatpush3.msra.mxu0 %v98_v8  ;;  %v531_v60 = vld [vmem:[%s992_s7] sm:$0xff]  ;;  %s561_s12 = sshll.u32 %s880_s6, 4  ;;  %s562_s12 = int_to_ptr.vmem [resolvable:$true] %s561_s12 }
  0x43   :  { %652 = vmatprep.subr.mxu0 %v97_v9  ;;  %s821_s13 = scalar_lea.vmem %s562_s12, 128  ;;  %p826_p7 = scmp.lt.s32.totalorder %s562_s12, %s562_s12 }
  0x44   :  { %653 = vmatpush3.msra.mxu0 %v97_v9  ;;  %p822_p6 = scmp.ne.s32.totalorder %s562_s12, %s821_s13  ;;  %p827_p8 = scmp.lt.s32.totalorder %s821_s13, %s821_s13 }
  0x45   :  { %654 = vmatprep.subr.mxu0 %v96_v10 }
  0x46   :  { %655 = vmatpush3.msra.mxu0 %v96_v10  ;;  %p828_p9 = por %p827_p8, %p826_p7 }
  0x47   :  { %656 = vmatprep.subr.mxu0 %v95_v11 }
  0x48   :  { %657 = vmatpush3.msra.mxu0 %v95_v11  ;;  %p829_p10 = pnand %p828_p9, %p822_p6 }
  0x49   :  { %658 = vmatprep.subr.mxu0 %v94_v12 }
  0x4a   :  { %659 = vmatpush3.msra.mxu0 %v94_v12 }
  0x4b   :  { %660 = vmatprep.subr.mxu0 %v93_v13 }
  0x4c   :  { %661 = vmatpush3.msra.mxu0 %v93_v13 }
  0x4d   :  { %662 = vmatprep.subr.mxu0 %v92_v14 }
  0x4e   :  { %663 = vmatpush3.msra.mxu0 %v92_v14 }
  0x4f   :  { %664 = vmatprep.subr.mxu0 %v91_v15 }
  0x50   :  { %665 = vmatpush3.msra.mxu0 %v91_v15 }
  0x51   :  { %666 = vmatprep.subr.mxu0 %v90_v16 }
  0x52   :  { %667 = vmatpush3.msra.mxu0 %v90_v16 }
  0x53   :  { %669 = vmatmul.mubr.f32.vlgmr.msra.gmra.mxu0 %v89_v17  ;;  %713 = vmatprep.subr.mxu0 %v877_v45 }
  0x54   :  { %717 = vmatprep.mubr.msk.f32.mxu0 %vm878_vm1, %v877_v45 }
 0x113   :  { %v670_v19 = vpop.f32.mrf.mxu0 }
 0x114   :  { %671 = vmatprep.subr.mxu1 %v670_v19 }
 0x115   :  { %v172_v20 = vpop.f32.mrf.mxu0  ;;  %672 = vmatpush3.msra.mxu1 %v670_v19 }
 0x116   :  { %673 = vmatprep.subr.mxu1 %v172_v20 }
 0x117   :  { %674 = vmatpush3.msra.mxu1 %v172_v20 }
 0x118   :  { %676 = vmatmul.mubr.msk.f32.vlgmr.msra.gmra.mxu1 %vm190_vm0, %v957_v21  ;;  %678 = vmatprep.subr.mxu1 %v289_v22 }
 0x119   :  { %679 = vmatpush3.msra.mxu1 %v289_v22 }
 0x11a   :  { %680 = vmatprep.subr.mxu1 %v288_v23 }
 0x11b   :  { %681 = vmatpush3.msra.mxu1 %v288_v23 }
 0x11c   :  { %682 = vmatprep.subr.mxu1 %v287_v24 }
 0x11d   :  { %683 = vmatpush3.msra.mxu1 %v287_v24 }
 0x11e   :  { %684 = vmatprep.subr.mxu1 %v286_v25 }
 0x11f   :  { %685 = vmatpush3.msra.mxu1 %v286_v25 }
 0x120   :  { %686 = vmatprep.subr.mxu1 %v285_v26 }
 0x121   :  { %687 = vmatpush3.msra.mxu1 %v285_v26 }
 0x122   :  { %688 = vmatprep.subr.mxu1 %v284_v27 }
 0x123   :  { %689 = vmatpush3.msra.mxu1 %v284_v27 }
 0x124   :  { %690 = vmatprep.subr.mxu1 %v283_v28 }
 0x125   :  { %691 = vmatpush3.msra.mxu1 %v283_v28 }
 0x126   :  { %692 = vmatprep.subr.mxu1 %v282_v29 }
 0x127   :  { %693 = vmatpush3.msra.mxu1 %v282_v29 }
 0x128   :  { %694 = vmatprep.subr.mxu1 %v281_v30 }
 0x129   :  { %695 = vmatpush3.msra.mxu1 %v281_v30 }
 0x12a   :  { %696 = vmatprep.subr.mxu1 %v280_v31 }
 0x12b   :  { %697 = vmatpush3.msra.mxu1 %v280_v31 }
 0x12c   :  { %698 = vmatprep.subr.mxu1 %v279_v32 }
 0x12d   :  { %699 = vmatpush3.msra.mxu1 %v279_v32 }
 0x12e   :  { %700 = vmatprep.subr.mxu1 %v278_v33 }
 0x12f   :  { %701 = vmatpush3.msra.mxu1 %v278_v33 }
 0x130   :  { %702 = vmatprep.subr.mxu1 %v277_v34 }
 0x131   :  { %703 = vmatpush3.msra.mxu1 %v277_v34 }
 0x132   :  { %704 = vmatprep.subr.mxu1 %v276_v35 }
 0x133   :  { %705 = vmatpush3.msra.mxu1 %v276_v35 }
 0x134   :  { %706 = vmatprep.subr.mxu1 %v275_v36 }
 0x135   :  { %707 = vmatpush3.msra.mxu1 %v275_v36 }
 0x136   :  { %708 = vmatprep.subr.mxu1 %v274_v37 }
 0x137   :  { %709 = vmatpush3.msra.mxu1 %v274_v37 }
 0x1d8   :  { %v677_v39 = vpop.f32.mrf.mxu1 }
 0x1d9   :  { %v269_v40 = vadd.f32 %v677_v39, %v586_v38 }
 0x1da   :  { %v263_v41 = vpop.f32.mrf.mxu1 }
 0x1db   :  { %v264_v42 = vadd.f32 %v586_v38, %v263_v41  ;;  %v273_v44 = vmax.f32 %v269_v40, 0.0 }
 0x1dd   :  { %v272_v43 = vmax.f32 %v264_v42, 0.0 }
 0x1df   :  { %710 = vmatprep.mubr.f32.mxu1 %v272_v43 }
 0x1e0   :  { %711 = vmatmul.mubr.f32.vlgmr.msra.gmra.mxu1 %v273_v44 }
 0x2a0   :  { %v712_v46 = vpop.f32.mrf.mxu1 }
 0x2a1   :  { %714 = vmatpush3.msra.mxu0 %v712_v46 }
 0x2a2   :  { %v356_v47 = vpop.f32.mrf.mxu1  ;;  %715 = vmatprep.subr.mxu0 %v877_v45 }
 0x2a3   :  { %716 = vmatpush3.msra.mxu0 %v356_v47 }
 0x2a4   :  { %718 = vmatmul.mubr.msk.f32.vlgmr.msra.gmra.mxu0 %vm190_vm0, %v957_v21  ;;  %720 = vmatprep.subr.mxu0 %v877_v45 }
 0x2a5   :  { %722 = vmatprep.mubr.msk.f32.mxu0 %vm878_vm1, %v877_v45 }
 0x364   :  { %v438_v49 = vpop.f32.mrf.mxu0 }
 0x365   :  { %v439_v50 = vadd.f32 %v589_v48, %v438_v49 }
 0x366   :  { %v719_v51 = vpop.f32.mrf.mxu0 }
 0x367   :  { %721 = vmatpush3.xpose.msra.mxu0 %v439_v50 }
 0x36a   :  { %723 = vmatmul.mubr.f32.vlgmr.msra.gmra.mxu0 %v442_v52 }
 0x42a   :  { %v509_v56 = vpop.f32.mrf.mxu0 }
 0x42b   :  { %v518_v57 = vsel %vm517_vm3, %v509_v56, -1e+30  ;;  %514 = vst.msk [vmem:[#allocation10] sm:$0xff] %vm513_vm2, %v509_v56 }
 0x42c   :  { %v724_v58 = vpop.f32.mrf.mxu0  ;;  %v519_v59 = vsel %vm513_vm2, %v518_v57, -inf }
 0x42d   :  { %520 = vmax.xlane.f32.xlu0 %v519_v59 }
 0x443   :  { %533 = vperm.xlu0 %736, %v531_v60  }
 0x4b6   :  { %v521_v61 = vpop.xlane.xlu0 %520 }
 0x4b7   :  { %v522_v62 = vsub.f32 %v518_v57, %v521_v61 }
 0x4b9   :  { %v523_v63 = vmul.f32 1.442695, %v522_v62 }
 0x4bb   :  { %737 = vpow2.f32 %v523_v63 }
 0x4be   :  { %v534_v0 = vpop.permute.xlu0 %533 }
 0x4bf   :  { %vm535_vm4 = vcmp.eq.s32.totalorder %v516_v55, %v534_v0 }
 0x4c0   :  { %v536_v3 = vsel %vm535_vm4, %v509_v56, 0.0 }
 0x4c1   :  { %v537_v4 = vsel %vm513_vm2, %v536_v3, 0.0 }
 0x4c8   :  { %v738_v1 = vpop.eup %737 }
 0x4c9   :  { %v525_v2 = vsel %vm513_vm2, %v738_v1, 0.0 }
 0x4ca   :  { %526 = vadd.xlane.f32.xlu1 %v525_v2 }
 0x4ce   :  { %538 = vadd.xlane.f32.xlu1 %v537_v4 }
 0x4cf   :  { %832 = shalt.err (!%p829_p10)
}
 0x4d0   :  { %564 = dma.vmem_to_hbm [thread:$0]  %s562_s12, 128, %s993_s8, [#allocation4]   ;;  %vm553_vm5 = vcmask 0  }
 0x4d1   :  { %s881_s15 = smov [#allocation11]  }
 0x4d2   :  { %s571_s16 = sshll.u32 %s881_s15, 4  ;;  %s572_s16 = int_to_ptr.vmem [resolvable:$true] %s571_s16 }
 0x4d3   :  { %s841_s8 = scalar_lea.vmem %s572_s16, 16  ;;  %s845_s17 = scalar_lea.vmem %s572_s16, 32 }
 0x4d4   :  { %p842_p11 = scmp.ne.s32.totalorder %s572_s16, %s841_s8  ;;  %p846_p12 = scmp.lt.s32.totalorder %s572_s16, %s572_s16 }
 0x4d5   :  { %p847_p13 = scmp.lt.s32.totalorder %s845_s17, %s841_s8 }
 0x4d7   :  { %p848_p0 = por %p847_p13, %p846_p12 }
 0x4d9   :  { %p849_p1 = pnand %p848_p0, %p842_p11 }
 0x553   :  { %v527_v5 = vpop.xlane.xlu1 %526 }
 0x554   :  { %739 = vlog2.f32 %v527_v5 }
 0x557   :  { %v539_v9 = vpop.xlane.xlu1 %538 }
 0x561   :  { %v740_v6 = vpop.eup %739 }
 0x562   :  { %v529_v7 = vmul.f32 0.6931472, %v740_v6 }
 0x564   :  { %v530_v8 = vadd.f32 %v529_v7, %v521_v61 }
 0x566   :  { %v540_v10 = vsub.f32 %v530_v8, %v539_v9 }
 0x568   :  { %v545_v11 = vrot.slane %v540_v10, 4 }
 0x56a   :  { %v546_v12 = vadd.f32 %v545_v11, %v540_v10 }
 0x56c   :  { %v547_v13 = vrot.slane %v546_v12, 2 }
 0x56e   :  { %v548_v14 = vadd.f32 %v547_v13, %v546_v12 }
 0x570   :  { %v549_v15 = vrot.slane %v548_v14, 1 }
 0x572   :  { %v550_v16 = vadd.f32 %v549_v15, %v548_v14 }
 0x574   :  { %v552_v17 = vmul.f32 0.125, %v550_v16 }
 0x576   :  { %554 = vst.msk [vmem:[#allocation11] sm:$0x1] %vm553_vm5, %v552_v17 }
 0x577   :  { %852 = shalt.err (!%p849_p1)
}
 0x578   :  { %574 = dma.vmem_to_hbm [thread:$0]  %s572_s16, 16, %s994_s9, [#allocation12]  }
 0x579   :  { %867 = dma.done.wait [#allocation4], 128  }
 0x57a   :  { %868 = vsyncadd [#allocation4], 4294967168 }
 0x57b   :  { %869 = dma.done.wait [#allocation12], 16  }
 0x57c   :  { %870 = vsyncadd [#allocation12], 4294967280 }
 0x57d   :  { %581 = vsyncpa [#allocation3], 1 }
 0x57e   :  { %582 = vsyncpa [#allocation6], 1 }
 0x57f   :  { %583 = vsyncpa [#allocation9], 1 }
 0x580   :  { %584 = vsyncpa [#allocation4], 1 }
 0x581   :  { %585 = vsyncpa [#allocation12], 1 }

</bundles_post_ra>
